<compile_context>
chip_gen: v7x
topology: tpu7x:2x2x1
jax: 0.10.0
libtpu: 0.0.40
codegen_flags: <defaults>
</compile_context>

<pallas_src>
import jax
import jax.numpy as jnp
from jax.experimental import pallas as pl
from jax.experimental.pallas import tpu as pltpu

_LANES = 512                       # fallback lane width (multiple of 128)
_TARGET_BLOCK_BYTES = 4 << 20      # ~4 MiB per block
_VMEM_LIMIT_BYTES = 32 << 20       # 4 MiB blocks, in+out double-buffered = 16 MiB


def _identity_copy_kernel(x_ref, o_ref):
    # Straight lane-dense VMEM tile copy (HBM-DMA-bound).
    o_ref[...] = x_ref[...]


def _round_up(x, m):
    return ((x + m - 1) // m) * m


def _sublane(dtype):
    # 8 for f32, 16 for bf16, 32 for int8/fp8 (packed-sublane alignment).
    itemsize = jnp.dtype(dtype).itemsize
    return max(8, 32 // itemsize)


@jax.jit
def _materialized_identity(feature):
    """Bit-exact fresh-buffer copy of `feature` via a tiled Pallas kernel."""
    orig_shape = feature.shape
    dtype = feature.dtype
    n = feature.size

    if n == 0:                       # nothing to copy; avoid a zero-size grid
        return feature

    itemsize = jnp.dtype(dtype).itemsize
    sub = _sublane(dtype)

    # --- present the data as a lane-dense [rows, lanes] slab ------------------
    # The fast paths below are free row-major reshapes (no data movement);
    # padding (an extra HBM pass) only happens for truly ragged sizes.
    padded = False
    if (feature.ndim >= 2
            and orig_shape[-1] % 128 == 0
            and sub * orig_shape[-1] * itemsize <= _TARGET_BLOCK_BYTES):
        lanes = orig_shape[-1]
        x2d = feature.reshape(-1, lanes)
    elif n % _LANES == 0:
        lanes = _LANES
        x2d = feature.reshape(-1, lanes)
    else:
        # TODO(synk): handle the ragged tail with an in-kernel masked store
        # instead of a wrapper-side pad + slice (each is an extra HBM pass).
        lanes = _LANES
        pad = _round_up(n, lanes) - n
        x2d = jnp.pad(feature.reshape(-1), (0, pad)).reshape(-1, lanes)
        padded = True

    rows = x2d.shape[0]

    # --- tiling: ~4 MiB sublane-aligned blocks, >= 2 grid steps when possible -
    br = max(sub, (_TARGET_BLOCK_BYTES // (lanes * itemsize)) // sub * sub)
    if rows >= 2 * sub:
        # cap so the grid has at least 2 steps: both v7x TCs stream HBM.
        br = min(br, _round_up(pl.cdiv(rows, 2), sub))
    if br >= rows:
        br = rows                    # single full-extent block (always valid)
    grid = (pl.cdiv(rows, br),)

    out2d = pl.pallas_call(
        _identity_copy_kernel,
        out_shape=jax.ShapeDtypeStruct((rows, lanes), dtype),
        grid_spec=pltpu.PrefetchScalarGridSpec(
            num_scalar_prefetch=0,
            grid=grid,
            in_specs=[pl.BlockSpec((br, lanes), lambda i: (i, 0))],
            out_specs=pl.BlockSpec((br, lanes), lambda i: (i, 0)),
        ),
        compiler_params=pltpu.CompilerParams(
            dimension_semantics=("parallel",),
            vmem_limit_bytes=_VMEM_LIMIT_BYTES,
        ),
        cost_estimate=pl.CostEstimate(
            flops=0,
            transcendentals=0,
            bytes_accessed=2 * rows * lanes * itemsize,
        ),
    )(x2d)

    if padded:
        return out2d.reshape(-1)[:n].reshape(orig_shape)
    return out2d.reshape(orig_shape)


def identity_forward(feature, att_mask=None, head_mask=None,
                     materialize=False, **kwargs):
    """Pallas equivalent of Identity.forward: returns [feature].

    Default path performs no data movement at all (optimal for an identity).
    Set materialize=True to force a fresh HBM buffer via the lane-dense Pallas
    copy kernel.
    """
    if not materialize:
        return [feature]
    return [_materialized_identity(feature)]


if __name__ == "__main__":
    key = jax.random.PRNGKey(0)
    k1, k2, k3 = jax.random.split(key, 3)

    batch, seq, hidden = 2, 8, 32
    feature = jax.random.normal(k1, (batch, seq, hidden), dtype=jnp.float32)
    att_mask = jnp.ones((batch, seq), dtype=jnp.float32)    # ignored by forward
    head_mask = jnp.ones((batch, seq), dtype=jnp.float32)   # ignored by forward

    # Default (optimal) path: zero-copy identity.
    out_fast = identity_forward(feature, att_mask, head_mask)[0]
    out_fast = jax.block_until_ready(out_fast)
    assert out_fast.shape == feature.shape and out_fast.dtype == feature.dtype
    assert bool(jnp.array_equal(out_fast, feature))

    # Materializing Pallas path: 512 elements -> aligned fast path, no pad/slice.
    out_copy = identity_forward(feature, att_mask, head_mask, materialize=True)[0]
    out_copy = jax.block_until_ready(out_copy)
    assert out_copy.shape == feature.shape and out_copy.dtype == feature.dtype
    assert bool(jnp.array_equal(out_copy, feature))

    # Lane-aligned hidden dim: free reshape, multi-step grid (2 blocks).
    feat_aligned = jax.random.normal(k2, (2, 32, 256), dtype=jnp.float32)
    out_aligned = identity_forward(feat_aligned, None, None, materialize=True)[0]
    out_aligned = jax.block_until_ready(out_aligned)
    assert bool(jnp.array_equal(out_aligned, feat_aligned))

    # Ragged size: exercises the documented pad fallback.
    feat_ragged = jax.random.normal(k3, (3, 7, 5), dtype=jnp.float32)
    out_ragged = identity_forward(feat_ragged, None, None, materialize=True)[0]
    out_ragged = jax.block_until_ready(out_ragged)
    assert bool(jnp.array_equal(out_ragged, feat_ragged))

    print("KERNEL_OK")
</pallas_src>

<mosaic_0001>
module attributes {stable_mosaic.version = 11 : i64} {
  func.func @_identity_copy_kernel(%arg0: i32, %arg1: memref<1x512xf32, #tpu.memory_space<vmem>>, %arg2: memref<1x512xf32, #tpu.memory_space<vmem>>) attributes {dimension_semantics = [#tpu.dimension_semantics<parallel>], iteration_bounds = array<i64: 1>, scalar_prefetch = 0 : i64, scratch_operands = 0 : i64, tpu.core_type = #tpu.core_type<tc>, window_params = [{transform_indices = @transform_0, window_bounds = array<i64: 1, 512>}, {transform_indices = @transform_1, window_bounds = array<i64: 1, 512>}]} {
    %c0 = arith.constant 0 : index
    %c0_0 = arith.constant 0 : index
    %0 = vector.load %arg1[%c0, %c0_0] : memref<1x512xf32, #tpu.memory_space<vmem>>, vector<1x512xf32>
    %c0_1 = arith.constant 0 : index
    %c0_2 = arith.constant 0 : index
    %1 = vector.load %arg2[%c0_1, %c0_2] : memref<1x512xf32, #tpu.memory_space<vmem>>, vector<1x512xf32>
    tpu.vector_store %arg2[%c0_1, %c0_2], %0 {strides = array<i32>} : memref<1x512xf32, #tpu.memory_space<vmem>>, vector<1x512xf32>,
    return
  }
  func.func @transform_0(%arg0: i32) -> (i32, i32) {
    %c0_i32 = arith.constant 0 : i32
    %c0_i32_0 = arith.constant 0 : i32
    return %arg0, %c0_i32 : i32, i32
  }
  func.func @transform_1(%arg0: i32) -> (i32, i32) {
    %c0_i32 = arith.constant 0 : i32
    %c0_i32_0 = arith.constant 0 : i32
    return %arg0, %c0_i32 : i32, i32
  }
}

</mosaic_0001>

<bundles_post_ra>
// kernel: _materialized_identity.1
= control target key start
LH: loop header
LB: loop body
LE: loop exit
PB: predicated region body
PF: predicated region fallthrough
CT: control target
= control target key end

     0   :  { %v9_v0 = vlaneseq  ;;  %s34_s0 = inlined_call_operand.vmem [shape: f32[1,512], index: 0, kind: input, shape index: {}]   ;;  %s35_s1 = inlined_call_operand.vmem [shape: f32[1,512], index: 1, kind: output, shape index: {}]  }
   0x1   :  { %v8_v1 = vld [vmem:[%s34_s0] sm:$0xf] }
   0x2   :  { %vm11_vm0 = vcmp.lt.s32.totalorder %v9_v0, 512 }
   0x3   :  { %13 = vst.msk [vmem:[%s35_s1] sm:$0xf] %vm11_vm0, %v8_v1 }

</bundles_post_ra>
